<compile_context>
chip_gen: v6e
topology: v6e:2x2x1
jax: 0.10.0
libtpu: 0.0.40
codegen_flags: <defaults>
</compile_context>

<pallas_src>
from functools import partial

import jax
import jax.numpy as jnp
from jax.experimental import pallas as pl
from jax.experimental.pallas import tpu as pltpu

LEN_CELL = 10

# Deterministic "tau" weights from the module's __init__ (self.n == 3 -> tau3).
TAU_WEIGHTS = {
    3:  [0.9, 0.1, 0, 0, 0, 0, 0, 0, 0, 0],
    6:  [0.1, 0.8, 0.1, 0, 0, 0, 0, 0, 0, 0],
    9:  [0, 0.1, 0.8, 0.1, 0, 0, 0, 0, 0, 0],
    12: [0, 0, 0.1, 0.8, 0.1, 0, 0, 0, 0, 0],
    15: [0, 0, 0, 0.1, 0.8, 0.1, 0, 0, 0, 0],
    18: [0, 0, 0, 0, 0.1, 0.8, 0.1, 0, 0, 0],
    21: [0, 0, 0, 0, 0, 0.1, 0.8, 0.1, 0, 0],
    24: [0, 0, 0, 0, 0, 0, 0.1, 0.8, 0.1, 0],
}
TAU3 = tuple(float(v) for v in TAU_WEIGHTS[3])


def _lane_tile(hw, max_tile=2048):
    """Largest multiple-of-128 divisor of hw (capped at max_tile); otherwise the
    full extent (a full-array block is always a legal BlockSpec)."""
    if hw % 128 != 0:
        return hw
    best = 128
    for t in range(256, min(hw, max_tile) + 1, 128):
        if hw % t == 0:
            best = t
    return best


def _make_medulla_kernel(tau, C):
    """Build the per-tile kernel with tau baked in as compile-time constants."""
    taps = [(i, float(w)) for i, w in enumerate(tau) if float(w) != 0.0]

    def kernel(x_ref, g2_ref, g3_ref, tm1p3_ref, mi1p3_ref, g2n_ref, g3n_ref):
        # x_ref:  (C, tile)            input frame tile (lane-dense)
        # g2_ref: (LEN_CELL, tile)     delay-line state for Tm2 (pre-shift)
        # g3_ref: (LEN_CELL, tile)     delay-line state for Tm3 (pre-shift)
        x = x_ref[...]
        tm2 = jnp.maximum(-x, 0.0)   # torch.clamp(-x, min=0)
        tm3 = jnp.maximum(x, 0.0)    # torch.clamp( x, min=0)

        # Weighted sum over the delay line, computed from the OLD (pre-shift)
        # state.  Zero-weight taps are dropped at trace time.
        if taps:
            i0, w0 = taps[0]
            acc2 = w0 * g2_ref[i0:i0 + 1, :]
            acc3 = w0 * g3_ref[i0:i0 + 1, :]
            for i, w in taps[1:]:
                acc2 = acc2 + w * g2_ref[i:i + 1, :]
                acc3 = acc3 + w * g3_ref[i:i + 1, :]
        else:
            acc2 = jnp.zeros(tm1p3_ref.shape, x.dtype)
            acc3 = jnp.zeros(mi1p3_ref.shape, x.dtype)
        tm1p3_ref[...] = acc2.astype(tm1p3_ref.dtype)
        mi1p3_ref[...] = acc3.astype(mi1p3_ref.dtype)

        # Delay-line shift via direct slice stores (no concatenate temporary):
        #   new[0:C]        = rectified input
        #   new[C:LEN_CELL] = old[0:LEN_CELL - C]
        g2n_ref[0:C, :] = tm2
        g3n_ref[0:C, :] = tm3
        g2n_ref[C:LEN_CELL, :] = g2_ref[0:LEN_CELL - C, :]
        g3n_ref[C:LEN_CELL, :] = g3_ref[0:LEN_CELL - C, :]

    return kernel


@partial(jax.jit, static_argnames=("tau",), donate_argnums=(1, 2))
def medulla_forward(x, cell_gamma_tm2, cell_gamma_tm3, *, tau=TAU3):
    """One Medulla.forward step.

    x:              (1, C, H, W) float32
    cell_gamma_tm2: (1, LEN_CELL, H, W) float32 state (donated)
    cell_gamma_tm3: (1, LEN_CELL, H, W) float32 state (donated)

    Returns ([tm3, tm2, None, None, tm1Para3, Mi1Para3], new_gamma_tm2, new_gamma_tm3)
    with the same NCHW shapes / ordering as the PyTorch module.
    """
    assert x.ndim == 4 and x.shape[0] == 1, "Medulla state buffers assume batch size 1"
    _, C, H, W = x.shape
    assert C <= LEN_CELL, "delay-line shift assumes C <= lenCell (=10)"
    assert cell_gamma_tm2.shape == (1, LEN_CELL, H, W)
    assert cell_gamma_tm3.shape == (1, LEN_CELL, H, W)

    hw = H * W
    tile = _lane_tile(hw)
    grid = (hw // tile,)
    dtype = x.dtype

    # Lane-dense 2-D views: W*H on the lane axis, planes on the sublane axis.
    x2 = x.reshape(C, hw)
    g2 = cell_gamma_tm2.reshape(LEN_CELL, hw)
    g3 = cell_gamma_tm3.reshape(LEN_CELL, hw)

    kernel = _make_medulla_kernel(tau, C)

    spec_x = pl.BlockSpec((C, tile), lambda i: (0, i))
    spec_g = pl.BlockSpec((LEN_CELL, tile), lambda i: (0, i))
    spec_p = pl.BlockSpec((1, tile), lambda i: (0, i))

    out_shape = (
        jax.ShapeDtypeStruct((1, hw), dtype),         # tm1Para3Signal
        jax.ShapeDtypeStruct((1, hw), dtype),         # Mi1Para3Signal
        jax.ShapeDtypeStruct((LEN_CELL, hw), dtype),  # new cellGammaTm2
        jax.ShapeDtypeStruct((LEN_CELL, hw), dtype),  # new cellGammaTm3
    )

    tm1p3, mi1p3, g2n, g3n = pl.pallas_call(
        kernel,
        out_shape=out_shape,
        grid_spec=pltpu.PrefetchScalarGridSpec(
            num_scalar_prefetch=0,
            grid=grid,
            in_specs=[spec_x, spec_g, spec_g],
            out_specs=[spec_p, spec_p, spec_g, spec_g],
        ),
        # Reuse the old state buffers in place for the new state.
        input_output_aliases={1: 2, 2: 3},
        compiler_params=pltpu.CompilerParams(
            dimension_semantics=("parallel",),
        ),
    )(x2, g2, g3)

    new_g2 = g2n.reshape(1, LEN_CELL, H, W)
    new_g3 = g3n.reshape(1, LEN_CELL, H, W)
    # tm2/tm3 are byte-identical to the first C planes of the new state.
    tm2_signal = new_g2[:, :C]
    tm3_signal = new_g3[:, :C]
    tm1_para3 = tm1p3.reshape(1, 1, H, W)
    mi1_para3 = mi1p3.reshape(1, 1, H, W)

    # Return order matches the PyTorch module:
    # [tm3Signal, tm2Signal, Mi1Para5Signal, tm1Para5Signal, tm1Para3Signal, Mi1Para3Signal]
    outputs = [tm3_signal, tm2_signal, None, None, tm1_para3, mi1_para3]
    return outputs, new_g2, new_g3


def _ref_forward(x, g2, g3, w):
    """Plain-JAX reference matching the PyTorch semantics."""
    tm2 = jnp.maximum(-x, 0.0)
    tm3 = jnp.maximum(x, 0.0)
    wv = w.reshape(1, -1, 1, 1)
    tm1p3 = jnp.sum(g2 * wv, axis=1, keepdims=True)
    mi1p3 = jnp.sum(g3 * wv, axis=1, keepdims=True)
    C = x.shape[1]
    g2n = jnp.concatenate([tm2, g2[:, : LEN_CELL - C]], axis=1)
    g3n = jnp.concatenate([tm3, g3[:, : LEN_CELL - C]], axis=1)
    return [tm3, tm2, None, None, tm1p3, mi1p3], g2n, g3n


if __name__ == "__main__":
    key = jax.random.PRNGKey(0)
    N, C, H, W = 1, 2, 16, 16  # batch fixed to 1 by the module's state handling

    x1 = jax.random.normal(key, (N, C, H, W), dtype=jnp.float32)
    x2 = jax.random.normal(jax.random.fold_in(key, 1), (N, C, H, W), dtype=jnp.float32)

    # Fresh (zero) delay-line state, as created on the first forward call.
    g2 = jnp.zeros((N, LEN_CELL, H, W), dtype=jnp.float32)
    g3 = jnp.zeros((N, LEN_CELL, H, W), dtype=jnp.float32)
    # Independent buffers for the pure-JAX reference (the kernel path donates
    # its state buffers, so it must not share them with the reference).
    g2_r = jnp.zeros((N, LEN_CELL, H, W), dtype=jnp.float32)
    g3_r = jnp.zeros((N, LEN_CELL, H, W), dtype=jnp.float32)

    tau_arr = jnp.asarray(TAU3, dtype=jnp.float32)

    # Two stateful forward steps so the weighted delay-line sum is nonzero on
    # the second step.
    outs = outs_r = None
    for x in (x1, x2):
        outs, g2, g3 = medulla_forward(x, g2, g3)
        outs_r, g2_r, g3_r = _ref_forward(x, g2_r, g3_r, tau_arr)

    jax.block_until_ready((outs[0], outs[1], outs[4], outs[5], g2, g3))

    for a, b in zip([outs[0], outs[1], outs[4], outs[5], g2, g3],
                    [outs_r[0], outs_r[1], outs_r[4], outs_r[5], g2_r, g3_r]):
        assert a.shape == b.shape, f"shape mismatch {a.shape} vs {b.shape}"
        assert jnp.allclose(a, b, atol=1e-6), "mismatch vs. reference"
    assert outs[2] is None and outs[3] is None  # Mi1Para5Signal / tm1Para5Signal

    print("KERNEL_OK")
</pallas_src>

<mosaic_0001>
module attributes {stable_mosaic.version = 11 : i64} {
  func.func @kernel(%arg0: i32, %arg1: memref<2x256xf32, #tpu.memory_space<vmem>>, %arg2: memref<10x256xf32, #tpu.memory_space<vmem>>, %arg3: memref<10x256xf32, #tpu.memory_space<vmem>>, %arg4: memref<1x256xf32, #tpu.memory_space<vmem>>, %arg5: memref<1x256xf32, #tpu.memory_space<vmem>>, %arg6: memref<10x256xf32, #tpu.memory_space<vmem>>, %arg7: memref<10x256xf32, #tpu.memory_space<vmem>>) attributes {dimension_semantics = [#tpu.dimension_semantics<parallel>], iteration_bounds = array<i64: 1>, scalar_prefetch = 0 : i64, scratch_operands = 0 : i64, tpu.core_type = #tpu.core_type<tc>, window_params = [{transform_indices = @transform_0, window_bounds = array<i64: 2, 256>}, {transform_indices = @transform_1, window_bounds = array<i64: 10, 256>}, {transform_indices = @transform_2, window_bounds = array<i64: 10, 256>}, {transform_indices = @transform_3, window_bounds = array<i64: 1, 256>}, {transform_indices = @transform_4, window_bounds = array<i64: 1, 256>}, {transform_indices = @transform_5, window_bounds = array<i64: 10, 256>}, {transform_indices = @transform_6, window_bounds = array<i64: 10, 256>}]} {
    %c0 = arith.constant 0 : index
    %c0_0 = arith.constant 0 : index
    %0 = vector.load %arg1[%c0, %c0_0] : memref<2x256xf32, #tpu.memory_space<vmem>>, vector<2x256xf32>
    %cst = arith.constant 0.000000e+00 : f32
    %1 = vector.broadcast %cst : f32 to vector<2x256xf32>
    %2 = arith.subf %1, %0 : vector<2x256xf32>
    %cst_1 = arith.constant 0.000000e+00 : f32
    %3 = vector.broadcast %cst_1 : f32 to vector<2x256xf32>
    %4 = arith.maximumf %2, %3 : vector<2x256xf32>
    %cst_2 = arith.constant 0.000000e+00 : f32
    %5 = vector.broadcast %cst_2 : f32 to vector<2x256xf32>
    %6 = arith.maximumf %0, %5 : vector<2x256xf32>
    %c0_3 = arith.constant 0 : index
    %c0_4 = arith.constant 0 : index
    %7 = vector.load %arg2[%c0_3, %c0_4] : memref<10x256xf32, #tpu.memory_space<vmem>>, vector<1x256xf32>
    %cst_5 = arith.constant 0.899999976 : f32
    %8 = vector.broadcast %cst_5 : f32 to vector<1x256xf32>
    %9 = arith.mulf %8, %7 : vector<1x256xf32>
    %c0_6 = arith.constant 0 : index
    %c0_7 = arith.constant 0 : index
    %10 = vector.load %arg3[%c0_6, %c0_7] : memref<10x256xf32, #tpu.memory_space<vmem>>, vector<1x256xf32>
    %cst_8 = arith.constant 0.899999976 : f32
    %11 = vector.broadcast %cst_8 : f32 to vector<1x256xf32>
    %12 = arith.mulf %11, %10 : vector<1x256xf32>
    %c1 = arith.constant 1 : index
    %c0_9 = arith.constant 0 : index
    %13 = vector.load %arg2[%c1, %c0_9] : memref<10x256xf32, #tpu.memory_space<vmem>>, vector<1x256xf32>
    %cst_10 = arith.constant 1.000000e-01 : f32
    %14 = vector.broadcast %cst_10 : f32 to vector<1x256xf32>
    %15 = arith.mulf %14, %13 : vector<1x256xf32>
    %16 = arith.addf %9, %15 : vector<1x256xf32>
    %c1_11 = arith.constant 1 : index
    %c0_12 = arith.constant 0 : index
    %17 = vector.load %arg3[%c1_11, %c0_12] : memref<10x256xf32, #tpu.memory_space<vmem>>, vector<1x256xf32>
    %cst_13 = arith.constant 1.000000e-01 : f32
    %18 = vector.broadcast %cst_13 : f32 to vector<1x256xf32>
    %19 = arith.mulf %18, %17 : vector<1x256xf32>
    %20 = arith.addf %12, %19 : vector<1x256xf32>
    %c0_14 = arith.constant 0 : index
    %c0_15 = arith.constant 0 : index
    %21 = vector.load %arg4[%c0_14, %c0_15] : memref<1x256xf32, #tpu.memory_space<vmem>>, vector<1x256xf32>
    tpu.vector_store %arg4[%c0_14, %c0_15], %16 {strides = array<i32>} : memref<1x256xf32, #tpu.memory_space<vmem>>, vector<1x256xf32>,
    %c0_16 = arith.constant 0 : index
    %c0_17 = arith.constant 0 : index
    %22 = vector.load %arg5[%c0_16, %c0_17] : memref<1x256xf32, #tpu.memory_space<vmem>>, vector<1x256xf32>
    tpu.vector_store %arg5[%c0_16, %c0_17], %20 {strides = array<i32>} : memref<1x256xf32, #tpu.memory_space<vmem>>, vector<1x256xf32>,
    %c0_18 = arith.constant 0 : index
    %c0_19 = arith.constant 0 : index
    %23 = vector.load %arg6[%c0_18, %c0_19] : memref<10x256xf32, #tpu.memory_space<vmem>>, vector<2x256xf32>
    tpu.vector_store %arg6[%c0_18, %c0_19], %4 {strides = array<i32>} : memref<10x256xf32, #tpu.memory_space<vmem>>, vector<2x256xf32>,
    %c0_20 = arith.constant 0 : index
    %c0_21 = arith.constant 0 : index
    %24 = vector.load %arg7[%c0_20, %c0_21] : memref<10x256xf32, #tpu.memory_space<vmem>>, vector<2x256xf32>
    tpu.vector_store %arg7[%c0_20, %c0_21], %6 {strides = array<i32>} : memref<10x256xf32, #tpu.memory_space<vmem>>, vector<2x256xf32>,
    %c0_22 = arith.constant 0 : index
    %c0_23 = arith.constant 0 : index
    %25 = vector.load %arg2[%c0_22, %c0_23] : memref<10x256xf32, #tpu.memory_space<vmem>>, vector<8x256xf32>
    %c2 = arith.constant 2 : index
    %c0_24 = arith.constant 0 : index
    %26 = vector.load %arg6[%c2, %c0_24] : memref<10x256xf32, #tpu.memory_space<vmem>>, vector<8x256xf32>
    tpu.vector_store %arg6[%c2, %c0_24], %25 {strides = array<i32>} : memref<10x256xf32, #tpu.memory_space<vmem>>, vector<8x256xf32>,
    %c0_25 = arith.constant 0 : index
    %c0_26 = arith.constant 0 : index
    %27 = vector.load %arg3[%c0_25, %c0_26] : memref<10x256xf32, #tpu.memory_space<vmem>>, vector<8x256xf32>
    %c2_27 = arith.constant 2 : index
    %c0_28 = arith.constant 0 : index
    %28 = vector.load %arg7[%c2_27, %c0_28] : memref<10x256xf32, #tpu.memory_space<vmem>>, vector<8x256xf32>
    tpu.vector_store %arg7[%c2_27, %c0_28], %27 {strides = array<i32>} : memref<10x256xf32, #tpu.memory_space<vmem>>, vector<8x256xf32>,
    return
  }
  func.func @transform_0(%arg0: i32) -> (i32, i32) {
    %c0_i32 = arith.constant 0 : i32
    %c0_i32_0 = arith.constant 0 : i32
    return %c0_i32, %arg0 : i32, i32
  }
  func.func @transform_1(%arg0: i32) -> (i32, i32) {
    %c0_i32 = arith.constant 0 : i32
    %c0_i32_0 = arith.constant 0 : i32
    return %c0_i32, %arg0 : i32, i32
  }
  func.func @transform_2(%arg0: i32) -> (i32, i32) {
    %c0_i32 = arith.constant 0 : i32
    %c0_i32_0 = arith.constant 0 : i32
    return %c0_i32, %arg0 : i32, i32
  }
  func.func @transform_3(%arg0: i32) -> (i32, i32) {
    %c0_i32 = arith.constant 0 : i32
    %c0_i32_0 = arith.constant 0 : i32
    return %c0_i32, %arg0 : i32, i32
  }
  func.func @transform_4(%arg0: i32) -> (i32, i32) {
    %c0_i32 = arith.constant 0 : i32
    %c0_i32_0 = arith.constant 0 : i32
    return %c0_i32, %arg0 : i32, i32
  }
  func.func @transform_5(%arg0: i32) -> (i32, i32) {
    %c0_i32 = arith.constant 0 : i32
    %c0_i32_0 = arith.constant 0 : i32
    return %c0_i32, %arg0 : i32, i32
  }
  func.func @transform_6(%arg0: i32) -> (i32, i32) {
    %c0_i32 = arith.constant 0 : i32
    %c0_i32_0 = arith.constant 0 : i32
    return %c0_i32, %arg0 : i32, i32
  }
}

</mosaic_0001>

<bundles_post_ra>
// kernel: medulla_forward.1
= control target key start
LH: loop header
LB: loop body
LE: loop exit
PB: predicated region body
PF: predicated region fallthrough
CT: control target
= control target key end

     0   :  { %v34_v0 = vlaneseq  ;;  %v111_v3 = vmov 1983009808   ;;  %s216_s0 = inlined_call_operand.vmem [shape: f32[2,256], index: 0, kind: input, shape index: {}]   ;;  %s217_s1 = inlined_call_operand.vmem [shape: f32[10,256], index: 1, kind: input, shape index: {}, may-alias: {1,5}]   ;;  %s218_s2 = inlined_call_operand.vmem [shape: f32[10,256], index: 2, kind: input, shape index: {}, may-alias: {2,6}]   ;;  %s219_s5 = inlined_call_operand.vmem [shape: f32[10,256], index: 5, kind: output, shape index: {2}, may-alias: {1,5}]   ;;  %s220_s6 = inlined_call_operand.vmem [shape: f32[10,256], index: 6, kind: output, shape index: {3}, may-alias: {2,6}]   ;;  %s221_s3 = inlined_call_operand.vmem [shape: f32[1,256], index: 3, kind: output, shape index: {0}]   ;;  %s222_s4 = inlined_call_operand.vmem [shape: f32[1,256], index: 4, kind: output, shape index: {1}]  }
   0x1   :  { %v18_v1 = vld [vmem:[%s216_s0] sm:$0xf]  ;;  %v42_v4 = vunpack.c.l.s4 %v111_v3 }
   0x2   :  { %v22_v2 = vld [vmem:[%s217_s1] ss:$8 sm:$0x3]  ;;  %v19_v5 = vsub.f32 0.0, %v18_v1  ;;  %v45_v10 = vshrl.u32 %v34_v0, 7  ;;  %v21_v11 = vmax.f32 %v18_v1, 0.0 }
   0x3   :  { %v23_v6 = vmul.f32 0.9, %v22_v2  ;;  %v106_v7 = vld [vmem:[%s217_s1 + $0x1] ss:$8 sm:$0x3]  ;;  %v43_v9 = vunpack.c.0.s8 %v42_v4  ;;  %vm36_vm0 = vcmp.lt.s32.totalorder %v34_v0, 256 }
   0x4   :  { %v28_v8 = vmul.f32 0.1, %v106_v7  ;;  %v20_v12 = vmax.f32 %v19_v5, 0.0  ;;  %v24_v13 = vld [vmem:[%s218_s2] ss:$8 sm:$0x3] }
   0x5   :  { %v46_v14 = vsub.s32 %v43_v9, %v45_v10  ;;  %v25_v15 = vmul.f32 0.9, %v24_v13  ;;  %v107_v16 = vld [vmem:[%s218_s2 + $0x1] ss:$8 sm:$0x3] }
   0x6   :  { %v29_v17 = vadd.f32 %v28_v8, %v23_v6  ;;  %108 = vst.sshfl [vmem:[%s219_s5] sm:$0x3 pattern:$0x76325410] %v20_v12  ;;  %v32_v18 = vmul.f32 0.1, %v107_v16 }
   0x7   :  { %109 = vst.sshfl [vmem:[%s220_s6] sm:$0x3 pattern:$0x76325410] %v21_v11  ;;  %v47_v19 = vrot.slane %v20_v12, %v46_v14  ;;  %v60_v20 = vrot.slane %v21_v11, %v46_v14 }
   0x8   :  { %38 = vst.msk [vmem:[%s221_s3] sm:$0x3] %vm36_vm0, %v29_v17  ;;  %v33_v21 = vadd.f32 %v32_v18, %v25_v15 }
   0x9   :  { %v48_v22 = vcombine.high %v47_v19, %v47_v19  ;;  %v61_v23 = vcombine.high %v60_v20, %v60_v20 }
   0xa   :  { %39 = vst.msk [vmem:[%s222_s4] sm:$0x3] %vm36_vm0, %v33_v21 }
   0xb   :  { %52 = vst [vmem:[%s219_s5 + $0x8] sm:$0x3] %v48_v22  ;;  %65 = vst [vmem:[%s220_s6 + $0x8] sm:$0x3] %v61_v23 }
  0x12   :  { %v66_v24 = vld [vmem:[%s217_s1] sm:$0xff] }
  0x13   :  { %v78_v25 = vld [vmem:[%s218_s2] sm:$0xff]  ;;  %v70_v26 = vrot.slane %v66_v24, 6 }
  0x14   :  { %v82_v27 = vrot.slane %v78_v25, 6 }
  0x15   :  { %74 = vst [vmem:[%s219_s5] sm:$0xfc] %v70_v26  ;;  %76 = vst [vmem:[%s219_s5 + $0x10] sm:$0x3] %v70_v26 }
  0x16   :  { %86 = vst [vmem:[%s220_s6] sm:$0xfc] %v82_v27  ;;  %88 = vst [vmem:[%s220_s6 + $0x10] sm:$0x3] %v82_v27 }
  0x1c   :  { %v67_v28 = vld [vmem:[%s217_s1 + $0x8] sm:$0xff] }
  0x1d   :  { %v79_v29 = vld [vmem:[%s218_s2 + $0x8] sm:$0xff]  ;;  %v71_v30 = vrot.slane %v67_v28, 6 }
  0x1e   :  { %v83_v31 = vrot.slane %v79_v29, 6 }
  0x1f   :  { %75 = vst [vmem:[%s219_s5 + $0x8] sm:$0xfc] %v71_v30  ;;  %77 = vst [vmem:[%s219_s5 + $0x18] sm:$0x3] %v71_v30 }
  0x20   :  { %87 = vst [vmem:[%s220_s6 + $0x8] sm:$0xfc] %v83_v31  ;;  %89 = vst [vmem:[%s220_s6 + $0x18] sm:$0x3] %v83_v31 }

</bundles_post_ra>
